<compile_context>
chip_gen: v7x
topology: tpu7x:2x2x1
jax: 0.10.0
libtpu: 0.0.40
codegen_flags: <defaults>
</compile_context>

<pallas_src>
import jax
import jax.numpy as jnp
from jax import lax
from jax.experimental import pallas as pl
from jax.experimental.pallas import tpu as pltpu


def _head_kernel(x_ref, wq_ref, bq_ref, wk_ref, bk_ref, wv_ref, bv_ref, o_ref):
    # Full arrays resident in VMEM (single invocation, no grid).
    B, T, C = x_ref.shape
    hs = wq_ref.shape[1]

    # Fold B into M for the projections: one (B*T, C) @ (C, hs) pass each.
    x2d = x_ref[...].reshape(B * T, C)                       # (16, 32)

    # wq/bq arrive pre-scaled by C**-0.5 (folded at init), so no in-kernel mul.
    q = jnp.dot(x2d, wq_ref[...], preferred_element_type=jnp.float32) + bq_ref[...]
    k = jnp.dot(x2d, wk_ref[...], preferred_element_type=jnp.float32) + bk_ref[...]
    v = jnp.dot(x2d, wv_ref[...], preferred_element_type=jnp.float32) + bv_ref[...]

    q = q.reshape(B, T, hs)
    k = k.reshape(B, T, hs)
    v = v.reshape(B, T, hs)

    # Scores with the K-transpose folded into the contraction (no XLU transpose).
    wei = jnp.einsum("bqd,bkd->bqk", q, k,
                     preferred_element_type=jnp.float32)     # (B, T, T)

    # Causal (tril) mask built in-kernel.  -inf is safe here because the
    # diagonal is always unmasked, so every row max is finite and exp(-inf)==0.
    # (If reused with padding masks that can fully mask a row, switch to a
    # large finite negative instead.)
    row = lax.broadcasted_iota(jnp.int32, (T, T), 0)
    col = lax.broadcasted_iota(jnp.int32, (T, T), 1)
    causal = (row >= col)[None, :, :]                        # (1, T, T)
    wei = jnp.where(causal, wei, -jnp.inf)

    # Numerically stable softmax; exact normalization (see header note).
    wei = wei - jnp.max(wei, axis=-1, keepdims=True)
    p = jnp.exp(wei)
    p = p / jnp.sum(p, axis=-1, keepdims=True)
    # TODO(synk): attention dropout omitted (identity in eval mode)

    o_ref[...] = jnp.einsum("bqk,bkd->bqd", p, v,
                            preferred_element_type=jnp.float32)   # (B, T, hs)


def _head_pallas(x, wq, bq, wk, bk, wv, bv):
    B, T, C = x.shape
    hs = wq.shape[1]
    vmem = pl.BlockSpec(memory_space=pltpu.MemorySpace.VMEM)
    return pl.pallas_call(
        _head_kernel,
        out_shape=jax.ShapeDtypeStruct((B, T, hs), jnp.float32),
        in_specs=[vmem] * 7,
        out_specs=vmem,
    )(x, wq, bq, wk, bk, wv, bv)


def fold_scale_into_query(wq, bq, n_embd):
    """One-time (init) fold of the C**-0.5 score scale into the query linear.

    Matches the PyTorch module, which scales by n_embd (not head_size).
    Call once when building parameters — never per forward call.
    """
    scale = n_embd ** (-0.5)
    return wq * scale, bq * scale


def head_forward(x, wq_scaled, bq_scaled, wk, bk, wv, bv):
    """Mirrors Head.forward (eval).  Expects query params pre-scaled at init."""
    return _head_pallas(x, wq_scaled, bq_scaled, wk, bk, wv, bv)


def reference(x, wq, bq, wk, bk, wv, bv):
    """Pure-JAX reference mirroring the PyTorch Head.forward (eval mode)."""
    B, T, C = x.shape
    q = x @ wq + bq
    k = x @ wk + bk
    v = x @ wv + bv
    mask = jnp.tril(jnp.ones((T, T), dtype=bool))
    wei = (q @ jnp.swapaxes(k, -2, -1)) * (C ** -0.5)
    wei = jnp.where(mask, wei, -jnp.inf)
    wei = jax.nn.softmax(wei, axis=-1)
    return wei @ v


if __name__ == "__main__":
    # Pin matmul precision so kernel and reference use full-f32 MXU math and
    # the 1e-5 correctness tolerance is meaningful.
    jax.config.update("jax_default_matmul_precision", "highest")

    # config: n_embd=32, cw_size (seq) = 8, head_size = 8, dropout ignored (eval)
    B, T, C, head_size = 2, 8, 32, 8

    key = jax.random.PRNGKey(0)
    keys = jax.random.split(key, 8)
    x = jax.random.normal(keys[0], (B, T, C), dtype=jnp.float32)

    def init_w(k):
        return jax.random.normal(k, (C, head_size), dtype=jnp.float32) * 0.05

    def init_b(k):
        return jax.random.normal(k, (1, head_size), dtype=jnp.float32) * 0.05

    wq, bq = init_w(keys[1]), init_b(keys[2])
    wk, bk = init_w(keys[3]), init_b(keys[4])
    wv, bv = init_w(keys[5]), init_b(keys[6])

    # One-time (init) fold of the score scale into the query linear.
    wq_s, bq_s = fold_scale_into_query(wq, bq, n_embd=C)

    out = head_forward(x, wq_s, bq_s, wk, bk, wv, bv)
    out = jax.block_until_ready(out)

    ref = reference(x, wq, bq, wk, bk, wv, bv)
    assert out.shape == (B, T, head_size)
    assert jnp.allclose(out, ref, atol=1e-5, rtol=1e-5)

    print("KERNEL_OK")
</pallas_src>

<mosaic_0001>
module attributes {stable_mosaic.version = 11 : i64} {
  func.func @_head_kernel(%arg0: memref<2x8x32xf32, #tpu.memory_space<vmem>>, %arg1: memref<32x8xf32, #tpu.memory_space<vmem>>, %arg2: memref<1x8xf32, #tpu.memory_space<vmem>>, %arg3: memref<32x8xf32, #tpu.memory_space<vmem>>, %arg4: memref<1x8xf32, #tpu.memory_space<vmem>>, %arg5: memref<32x8xf32, #tpu.memory_space<vmem>>, %arg6: memref<1x8xf32, #tpu.memory_space<vmem>>, %arg7: memref<2x8x8xf32, #tpu.memory_space<vmem>>) attributes {dimension_semantics = [], scalar_prefetch = 0 : i64, scratch_operands = 0 : i64, tpu.core_type = #tpu.core_type<tc>} {
    %c0 = arith.constant 0 : index
    %c0_0 = arith.constant 0 : index
    %c0_1 = arith.constant 0 : index
    %0 = vector.load %arg0[%c0, %c0_0, %c0_1] : memref<2x8x32xf32, #tpu.memory_space<vmem>>, vector<2x8x32xf32>
    %1 = vector.shape_cast %0 : vector<2x8x32xf32> to vector<16x32xf32>
    %c0_2 = arith.constant 0 : index
    %c0_3 = arith.constant 0 : index
    %2 = vector.load %arg1[%c0_2, %c0_3] : memref<32x8xf32, #tpu.memory_space<vmem>>, vector<32x8xf32>
    %cst = arith.constant dense<0.000000e+00> : vector<16x8xf32>
    %3 = tpu.matmul %1, %2, %cst {dimension_numbers = #tpu.dot_dimension_numbers<[1], [0], [0], [1], [0, 0, 1, 1], [], []>, precision = #tpu.contract_precision<fp32>} : vector<16x32xf32>, vector<32x8xf32>, vector<16x8xf32> -> vector<16x8xf32>
    %c0_4 = arith.constant 0 : index
    %c0_5 = arith.constant 0 : index
    %4 = vector.load %arg2[%c0_4, %c0_5] : memref<1x8xf32, #tpu.memory_space<vmem>>, vector<1x8xf32>
    %5 = vector.broadcast %4 : vector<1x8xf32> to vector<16x8xf32>
    %6 = arith.addf %3, %5 : vector<16x8xf32>
    %c0_6 = arith.constant 0 : index
    %c0_7 = arith.constant 0 : index
    %7 = vector.load %arg3[%c0_6, %c0_7] : memref<32x8xf32, #tpu.memory_space<vmem>>, vector<32x8xf32>
    %cst_8 = arith.constant dense<0.000000e+00> : vector<16x8xf32>
    %8 = tpu.matmul %1, %7, %cst_8 {dimension_numbers = #tpu.dot_dimension_numbers<[1], [0], [0], [1], [0, 0, 1, 1], [], []>, precision = #tpu.contract_precision<fp32>} : vector<16x32xf32>, vector<32x8xf32>, vector<16x8xf32> -> vector<16x8xf32>
    %c0_9 = arith.constant 0 : index
    %c0_10 = arith.constant 0 : index
    %9 = vector.load %arg4[%c0_9, %c0_10] : memref<1x8xf32, #tpu.memory_space<vmem>>, vector<1x8xf32>
    %10 = vector.broadcast %9 : vector<1x8xf32> to vector<16x8xf32>
    %11 = arith.addf %8, %10 : vector<16x8xf32>
    %c0_11 = arith.constant 0 : index
    %c0_12 = arith.constant 0 : index
    %12 = vector.load %arg5[%c0_11, %c0_12] : memref<32x8xf32, #tpu.memory_space<vmem>>, vector<32x8xf32>
    %cst_13 = arith.constant dense<0.000000e+00> : vector<16x8xf32>
    %13 = tpu.matmul %1, %12, %cst_13 {dimension_numbers = #tpu.dot_dimension_numbers<[1], [0], [0], [1], [0, 0, 1, 1], [], []>, precision = #tpu.contract_precision<fp32>} : vector<16x32xf32>, vector<32x8xf32>, vector<16x8xf32> -> vector<16x8xf32>
    %c0_14 = arith.constant 0 : index
    %c0_15 = arith.constant 0 : index
    %14 = vector.load %arg6[%c0_14, %c0_15] : memref<1x8xf32, #tpu.memory_space<vmem>>, vector<1x8xf32>
    %15 = vector.broadcast %14 : vector<1x8xf32> to vector<16x8xf32>
    %16 = arith.addf %13, %15 : vector<16x8xf32>
    %17 = vector.shape_cast %6 : vector<16x8xf32> to vector<2x8x8xf32>
    %18 = vector.shape_cast %11 : vector<16x8xf32> to vector<2x8x8xf32>
    %19 = vector.shape_cast %16 : vector<16x8xf32> to vector<2x8x8xf32>
    "tpu.trace_start"() <{level = 10 : i32, message = "bqd,bkd->bqk"}> : () -> ()
    %cst_16 = arith.constant dense<0.000000e+00> : vector<2x8x8xf32>
    %20 = tpu.matmul %17, %18, %cst_16 {dimension_numbers = #tpu.dot_dimension_numbers<[2], [2], [1], [1], [0, 0, 0, 1, 1, 1], [0], [0]>, precision = #tpu.contract_precision<fp32>} : vector<2x8x8xf32>, vector<2x8x8xf32>, vector<2x8x8xf32> -> vector<2x8x8xf32>
    "tpu.trace_stop"() : () -> ()
    %21 = tpu.iota {dimensions = array<i32: 0>} : vector<8x8xi32>
    %22 = tpu.iota {dimensions = array<i32: 1>} : vector<8x8xi32>
    %23 = arith.cmpi sge, %21, %22 : vector<8x8xi32>
    %24 = vector.shape_cast %23 : vector<8x8xi1> to vector<1x8x8xi1>
    %cst_17 = arith.constant 0xFF800000 : f32
    %25 = vector.shape_cast %24 : vector<1x8x8xi1> to vector<1x8x8xi1>
    %26 = vector.broadcast %25 : vector<1x8x8xi1> to vector<2x8x8xi1>
    %27 = vector.broadcast %cst_17 : f32 to vector<2x8x8xf32>
    %28 = arith.select %26, %20, %27 : vector<2x8x8xi1>, vector<2x8x8xf32>
    %cst_18 = arith.constant dense<0xFF800000> : vector<2x8xf32>
    %29 = vector.multi_reduction <maximumf>, %28, %cst_18 [2] : vector<2x8x8xf32> to vector<2x8xf32>
    %30 = vector.shape_cast %29 : vector<2x8xf32> to vector<2x8x1xf32>
    %31 = vector.broadcast %30 : vector<2x8x1xf32> to vector<2x8x8xf32>
    %32 = arith.subf %28, %31 : vector<2x8x8xf32>
    %33 = math.exp %32 : vector<2x8x8xf32>
    %cst_19 = arith.constant dense<0.000000e+00> : vector<2x8xf32>
    %34 = vector.multi_reduction <add>, %33, %cst_19 [2] : vector<2x8x8xf32> to vector<2x8xf32>
    %35 = vector.shape_cast %34 : vector<2x8xf32> to vector<2x8x1xf32>
    %36 = vector.broadcast %35 : vector<2x8x1xf32> to vector<2x8x8xf32>
    %37 = arith.divf %33, %36 : vector<2x8x8xf32>
    "tpu.trace_start"() <{level = 10 : i32, message = "bqk,bkd->bqd"}> : () -> ()
    %cst_20 = arith.constant dense<0.000000e+00> : vector<2x8x8xf32>
    %38 = tpu.matmul %37, %19, %cst_20 {dimension_numbers = #tpu.dot_dimension_numbers<[2], [1], [1], [2], [0, 0, 0, 1, 1, 2], [0], [0]>, precision = #tpu.contract_precision<fp32>} : vector<2x8x8xf32>, vector<2x8x8xf32>, vector<2x8x8xf32> -> vector<2x8x8xf32>
    "tpu.trace_stop"() : () -> ()
    %c0_21 = arith.constant 0 : index
    %c0_22 = arith.constant 0 : index
    %c0_23 = arith.constant 0 : index
    %39 = vector.load %arg7[%c0_21, %c0_22, %c0_23] : memref<2x8x8xf32, #tpu.memory_space<vmem>>, vector<2x8x8xf32>
    tpu.vector_store %arg7[%c0_21, %c0_22, %c0_23], %38 {strides = array<i32>} : memref<2x8x8xf32, #tpu.memory_space<vmem>>, vector<2x8x8xf32>,
    return
  }
}

</mosaic_0001>

<bundles_post_ra>
// kernel: tpu_custom_call.1
= control target key start
LH: loop header
LB: loop body
LE: loop exit
PB: predicated region body
PF: predicated region fallthrough
CT: control target
= control target key end

     0   :  { %vm40_vm0 = vcmask 261120   ;;  %s4590_s0 = inlined_call_operand.vmem [shape: f32[2,8,32], index: 0, kind: input, shape index: {}]   ;;  %s4591_s1 = inlined_call_operand.vmem [shape: f32[32,8], index: 1, kind: input, shape index: {}]   ;;  %s4592_s2 = inlined_call_operand.vmem [shape: f32[1,8], index: 2, kind: input, shape index: {}]   ;;  %s4593_s3 = inlined_call_operand.vmem [shape: f32[32,8], index: 3, kind: input, shape index: {}]   ;;  %s4594_s4 = inlined_call_operand.vmem [shape: f32[1,8], index: 4, kind: input, shape index: {}]   ;;  %s4595_s5 = inlined_call_operand.vmem [shape: f32[32,8], index: 5, kind: input, shape index: {}]   ;;  %s4596_s6 = inlined_call_operand.vmem [shape: f32[1,8], index: 6, kind: input, shape index: {}]   ;;  %s4597_s7 = inlined_call_operand.hbm [shape: f32[2,8,8], index: 7, kind: output, shape index: {}]  }
   0x1   :  { %v29_v0 = vld [vmem:[%s4591_s1] sm:$0xff]  ;;  %v30_v1 = vld [vmem:[%s4591_s1 + $0x8] sm:$0xff]  ;;  %v31_v7 = vld [vmem:[%s4591_s1 + $0x10] sm:$0xff] }
   0x2   :  { %v575_v2 = vld [vmem:[%s4593_s3] sm:$0xff]  ;;  %v48_v3 = vand.u32 4294901760, %v29_v0  ;;  %v51_v4 = vand.u32 4294901760, %v30_v1  ;;  %v576_v5 = vld [vmem:[%s4593_s3 + $0x8] sm:$0xff]  ;;  %v32_v8 = vld [vmem:[%s4591_s1 + $0x18] sm:$0xff]  ;;  %v54_v10 = vand.u32 4294901760, %v31_v7 }
   0x3   :  { %v587_v6 = vand.u32 4294901760, %v575_v2  ;;  %v590_v9 = vand.u32 4294901760, %v576_v5  ;;  %v57_v11 = vand.u32 4294901760, %v32_v8  ;;  %v577_v12 = vld [vmem:[%s4593_s3 + $0x10] sm:$0xff]  ;;  %v578_v13 = vld [vmem:[%s4593_s3 + $0x18] sm:$0xff]  ;;  %v27_v14 = vld [vmem:[%s4590_s0] sm:$0xff] }
   0x4   :  { %v4311_v15 = vpack.c.bf16 %v51_v4, %v48_v3  ;;  %v593_v16 = vand.u32 4294901760, %v577_v12  ;;  %v596_v17 = vand.u32 4294901760, %v578_v13  ;;  %v42_v18 = vsel %vm40_vm0, %v27_v14, 0  ;;  %v28_v19 = vld [vmem:[%s4590_s0 + $0x8] sm:$0xff] }
   0x5   :  { %v4317_v20 = vpack.c.bf16 %v590_v9, %v587_v6  ;;  %v4319_v21 = vpack.c.bf16 %v57_v11, %v54_v10  ;;  %v4321_v22 = vand.u32 4294901760, %v42_v18  ;;  %v45_v23 = vsel %vm40_vm0, %v28_v19, 0 }
   0x6   :  { %12 = vsyncpa [#allocation3], 0  ;;  %3983 = vmatprep.subr.bf16.mxu0 %v4311_v15  ;;  %v4325_v24 = vpack.c.bf16 %v596_v17, %v593_v16  ;;  %v4327_v25 = vand.u32 4294901760, %v45_v23  ;;  %v4329_v26 = vsub.f32 %v29_v0, %v48_v3  ;;  %v4331_v27 = vsub.f32 %v30_v1, %v51_v4  ;;  %v3506_v19 = vld [vmem:[%s4594_s4] ss:$0 sm:$0xff] }
   0x7   :  { %4031 = vmatprep.subr.bf16.mxu1 %v4317_v20  ;;  %3985 = vmatpush3.bf16.msra.mxu0 %v4311_v15  ;;  %v4336_v28 = vsub.f32 %v42_v18, %v4321_v22  ;;  %v4338_v29 = vsub.f32 %v575_v2, %v587_v6  ;;  %v4340_v30 = vsub.f32 %v576_v5, %v590_v9  ;;  %v4239_v14 = vmov 0.0  }
   0x8   :  { %4033 = vmatpush3.bf16.msra.mxu1 %v4317_v20  ;;  %3987 = vmatprep.subr.bf16.mxu0 %v4319_v21  ;;  %v4345_v31 = vsub.f32 %v45_v23, %v4327_v25  ;;  %v139_v32 = vand.u32 4294901760, %v4329_v26  ;;  %v146_v33 = vand.u32 4294901760, %v4331_v27  ;;  %v4349_v34 = vsub.f32 %v31_v7, %v54_v10 }
   0x9   :  { %4035 = vmatprep.subr.bf16.mxu1 %v4325_v24  ;;  %v4353_v35 = vand.u32 4294901760, %v4336_v28  ;;  %v678_v36 = vand.u32 4294901760, %v4338_v29  ;;  %v685_v37 = vand.u32 4294901760, %v4340_v30  ;;  %v4357_v38 = vsub.f32 %v32_v8, %v57_v11 }
   0xa   :  { %v4360_v39 = vand.u32 4294901760, %v4345_v31  ;;  %v140_v40 = vsub.f32 %v4329_v26, %v139_v32  ;;  %v147_v41 = vsub.f32 %v4331_v27, %v146_v33  ;;  %v153_v42 = vand.u32 4294901760, %v4349_v34 }
   0xb   :  { %3989 = vmatpush3.bf16.msra.mxu0 %v4319_v21  ;;  %v119_v43 = vsub.f32 %v4336_v28, %v4353_v35  ;;  %v679_v44 = vsub.f32 %v4338_v29, %v678_v36  ;;  %v686_v45 = vsub.f32 %v4340_v30, %v685_v37  ;;  %v160_v46 = vand.u32 4294901760, %v4357_v38 }
   0xc   :  { %4037 = vmatpush3.bf16.msra.mxu1 %v4325_v24  ;;  %v129_v47 = vsub.f32 %v4345_v31, %v4360_v39  ;;  %v141_v48 = vand.u32 4294901760, %v140_v40  ;;  %v148_v49 = vand.u32 4294901760, %v147_v41  ;;  %v154_v50 = vsub.f32 %v4349_v34, %v153_v42 }
   0xd   :  { %v4385_v51 = vand.u32 4294901760, %v119_v43  ;;  %v680_v52 = vand.u32 4294901760, %v679_v44  ;;  %v687_v53 = vand.u32 4294901760, %v686_v45  ;;  %v161_v54 = vsub.f32 %v4357_v38, %v160_v46 }
   0xe   :  { %v4390_v55 = vand.u32 4294901760, %v129_v47  ;;  %v3990_v56 = vpack.c.bf16 %v148_v49, %v141_v48  ;;  %v155_v57 = vand.u32 4294901760, %v154_v50  ;;  %v4392_v58 = vsub.f32 %v577_v12, %v593_v16 }
   0xf   :  { %3672 = vmatprep.mubr.f32.mxu0 %v4385_v51  ;;  %3738 = vmatprep.mubr.f32.mxu1 %v4385_v51  ;;  %v4038_v59 = vpack.c.bf16 %v687_v53, %v680_v52  ;;  %v162_v60 = vand.u32 4294901760, %v161_v54  ;;  %v698_v61 = vsub.f32 %v578_v13, %v596_v17  ;;  %v3998_v3 = vpack.c.bf16 %v4331_v27, %v4329_v26 }
  0x10   :  { %3673 = vmatmul.mubr.f32.vlgmr.msra.gmra.mrb[0].mxu0 %v4390_v55  ;;  %3991 = vmatprep.subr.bf16.mxu0 %v3990_v56  ;;  %v692_v62 = vand.u32 4294901760, %v4392_v58  ;;  %v4046_v7 = vpack.c.bf16 %v4340_v30, %v4338_v29  ;;  %v4002_v8 = vpack.c.bf16 %v4357_v38, %v4349_v34  ;;  %v4014_v10 = vpack.c.bf16 %v146_v33, %v139_v32 }
  0x11   :  { %3739 = vmatmul.mubr.f32.vlgmr.msra.gmra.mrb[0].mxu1 %v4390_v55  ;;  %4039 = vmatprep.subr.bf16.mxu1 %v4038_v59  ;;  %v3994_v63 = vpack.c.bf16 %v162_v60, %v155_v57  ;;  %v699_v0 = vand.u32 4294901760, %v698_v61  ;;  %v4050_v9 = vpack.c.bf16 %v698_v61, %v4392_v58  ;;  %v4062_v11 = vpack.c.bf16 %v685_v37, %v678_v36  ;;  %v1115_v57 = vld [vmem:[%s4595_s5 + $0x8] sm:$0xff] }
  0x12   :  { %3993 = vmatpush3.bf16.msra.mxu0 %v3990_v56  ;;  %4041 = vmatpush3.bf16.msra.mxu1 %v4038_v59  ;;  %v693_v1 = vsub.f32 %v4392_v58, %v692_v62  ;;  %v4018_v12 = vpack.c.bf16 %v160_v46, %v153_v42  ;;  %vm4240_vm1 = vmmov 0   ;;  %vm1653_vm2 = vcmask 64512   ;;  %v1114_v56 = vld [vmem:[%s4595_s5] sm:$0xff]  ;;  %v1116_v58 = vld [vmem:[%s4595_s5 + $0x10] sm:$0xff] }
  0x13   :  { %3995 = vmatprep.subr.bf16.mxu0 %v3994_v63  ;;  %v700_v2 = vsub.f32 %v698_v61, %v699_v0  ;;  %3683 = vmatprep.mubr.f32.mxu0 %v4321_v22  ;;  %v4066_v13 = vpack.c.bf16 %v699_v0, %v692_v62  ;;  %v1126_v59 = vand.u32 4294901760, %v1114_v56  ;;  %v1129_v60 = vand.u32 4294901760, %v1115_v57  ;;  %v1117_v61 = vld [vmem:[%s4595_s5 + $0x18] sm:$0xff] }
  0x14   :  { %v694_v4 = vand.u32 4294901760, %v693_v1  ;;  %3749 = vmatprep.mubr.f32.mxu1 %v4321_v22  ;;  %v1132_v62 = vand.u32 4294901760, %v1116_v58 }
  0x15   :  { %v701_v5 = vand.u32 4294901760, %v700_v2  ;;  %v4078_v0 = vpack.c.bf16 %v1129_v60, %v1126_v59  ;;  %v1216_v1 = vsub.f32 %v1114_v56, %v1126_v59  ;;  %v1223_v2 = vsub.f32 %v1115_v57, %v1129_v60 }
  0x16   :  { %3997 = vmatpush3.bf16.msra.mxu0 %v3994_v63  ;;  %v1135_v63 = vand.u32 4294901760, %v1117_v61 }
  0x17   :  { %v4042_v6 = vpack.c.bf16 %v701_v5, %v694_v4  ;;  %3999 = vmatprep.subr.bf16.mxu0 %v3998_v3 }
  0x18   :  { %v4082_v4 = vpack.c.bf16 %v1135_v63, %v1132_v62  ;;  %v1237_v5 = vsub.f32 %v1117_v61, %v1135_v63 }
  0x19   :  { %4043 = vmatprep.subr.bf16.mxu1 %v4042_v6  ;;  %3684 = vmatmul.mubr.f32.vlgmr.msra.gmra.mrb[0].mxu0 %v4327_v25 }
  0x1a   :  { %4045 = vmatpush3.bf16.msra.mxu1 %v4042_v6  ;;  %4001 = vmatpush3.bf16.msra.mxu0 %v3998_v3  ;;  %v1230_v3 = vsub.f32 %v1116_v58, %v1132_v62  ;;  %v1217_v6 = vand.u32 4294901760, %v1216_v1 }
  0x1b   :  { %4047 = vmatprep.subr.bf16.mxu1 %v4046_v7  ;;  %4003 = vmatprep.subr.bf16.mxu0 %v4002_v8 }
  0x1c   :  { %3694 = vmatprep.mubr.f32.mxu0 %v4336_v28 }
  0x1d   :  { %3750 = vmatmul.mubr.f32.vlgmr.msra.gmra.mrb[0].mxu1 %v4327_v25 }
  0x1e   :  { %4049 = vmatpush3.bf16.msra.mxu1 %v4046_v7  ;;  %4005 = vmatpush3.bf16.msra.mxu0 %v4002_v8  ;;  %v1224_v7 = vand.u32 4294901760, %v1223_v2  ;;  %v1231_v8 = vand.u32 4294901760, %v1230_v3 }
  0x1f   :  { %4051 = vmatprep.subr.bf16.mxu1 %v4050_v9  ;;  %3760 = vmatprep.mubr.f32.mxu1 %v4336_v28 }
  0x20   :  { %4007 = vmatprep.subr.bf16.mxu0 %v4311_v15 }
  0x21   :  { %3695 = vmatmul.mubr.f32.vlgmr.msra.gmra.mrb[0].mxu0 %v4345_v31 }
  0x22   :  { %4053 = vmatpush3.bf16.msra.mxu1 %v4050_v9  ;;  %4009 = vmatpush3.bf16.msra.mxu0 %v4311_v15  ;;  %v1238_v9 = vand.u32 4294901760, %v1237_v5 }
  0x23   :  { %4055 = vmatprep.subr.bf16.mxu1 %v4317_v20  ;;  %4011 = vmatprep.subr.bf16.mxu0 %v4319_v21 }
  0x24   :  { %3705 = vmatprep.mubr.f32.mxu0 %v4353_v35 }
  0x25   :  { %3761 = vmatmul.mubr.f32.vlgmr.msra.gmra.mrb[0].mxu1 %v4345_v31 }
  0x26   :  { %4057 = vmatpush3.bf16.msra.mxu1 %v4317_v20  ;;  %4013 = vmatpush3.bf16.msra.mxu0 %v4319_v21 }
  0x27   :  { %4059 = vmatprep.subr.bf16.mxu1 %v4325_v24  ;;  %3771 = vmatprep.mubr.f32.mxu1 %v4353_v35 }
  0x28   :  { %4015 = vmatprep.subr.bf16.mxu0 %v4014_v10 }
  0x29   :  { %3706 = vmatmul.mubr.f32.vlgmr.msra.gmra.mrb[0].mxu0 %v4360_v39 }
  0x2a   :  { %4061 = vmatpush3.bf16.msra.mxu1 %v4325_v24  ;;  %4017 = vmatpush3.bf16.msra.mxu0 %v4014_v10  ;;  %v1218_v10 = vsub.f32 %v1216_v1, %v1217_v6 }
  0x2b   :  { %4063 = vmatprep.subr.bf16.mxu1 %v4062_v11  ;;  %4019 = vmatprep.subr.bf16.mxu0 %v4018_v12 }
  0x2c   :  { %3716 = vmatprep.mubr.f32.mxu0 %v4321_v22 }
  0x2d   :  { %3772 = vmatmul.mubr.f32.vlgmr.msra.gmra.mrb[0].mxu1 %v4360_v39 }
  0x2e   :  { %4065 = vmatpush3.bf16.msra.mxu1 %v4062_v11  ;;  %4021 = vmatpush3.bf16.msra.mxu0 %v4018_v12  ;;  %v1225_v11 = vsub.f32 %v1223_v2, %v1224_v7  ;;  %v1232_v12 = vsub.f32 %v1230_v3, %v1231_v8 }
  0x2f   :  { %4067 = vmatprep.subr.bf16.mxu1 %v4066_v13  ;;  %3782 = vmatprep.mubr.f32.mxu1 %v4321_v22 }
  0x30   :  { %4023 = vmatprep.subr.bf16.mxu0 %v4311_v15 }
  0x31   :  { %3717 = vmatmul.mubr.f32.vlgmr.msra.gmra.mrb[0].mxu0 %v4327_v25 }
  0x32   :  { %4069 = vmatpush3.bf16.msra.mxu1 %v4066_v13  ;;  %4025 = vmatpush3.bf16.msra.mxu0 %v4311_v15  ;;  %v3505_v15 = vld [vmem:[%s4592_s2] ss:$0 sm:$0xff]  ;;  %v1239_v13 = vsub.f32 %v1237_v5, %v1238_v9 }
  0x33   :  { %4071 = vmatprep.subr.bf16.mxu1 %v4317_v20  ;;  %4027 = vmatprep.subr.bf16.mxu0 %v4319_v21 }
  0x34   :  { %3727 = vmatprep.mubr.f32.mxu0 %v4321_v22 }
  0x35   :  { %3783 = vmatmul.mubr.f32.vlgmr.msra.gmra.mrb[0].mxu1 %v4327_v25 }
  0x36   :  { %4073 = vmatpush3.bf16.msra.mxu1 %v4317_v20  ;;  %4029 = vmatpush3.bf16.msra.mxu0 %v4319_v21 }
  0x37   :  { %4075 = vmatprep.subr.bf16.mxu1 %v4325_v24  ;;  %3793 = vmatprep.mubr.f32.mxu1 %v4321_v22 }
  0x38   :  { %4079 = vmatprep.subr.bf16.mxu0 %v4078_v0 }
  0x39   :  { %3728 = vmatmul.mubr.f32.vlgmr.msra.gmra.mrb[0].mxu0 %v4327_v25 }
  0x3a   :  { %4077 = vmatpush3.bf16.msra.mxu1 %v4325_v24  ;;  %3804 = vmatprep.mubr.f32.mxu0 %v4385_v51 }
  0x3b   :  { %3862 = vmatprep.subr.mxu1 %v4239_v14  ;;  %4081 = vmatpush3.bf16.msra.mxu0 %v4078_v0 }
  0x3c   :  { %4083 = vmatprep.subr.bf16.mxu0 %v4082_v4 }
  0x3d   :  { %3794 = vmatmul.mubr.f32.vlgmr.msra.gmra.mrb[0].mxu1 %v4327_v25 }
  0x3e   :  { %3864 = vmatprep.mubr.msk.f32.mxu1 %vm4240_vm1, %v4239_v14 }
  0x3f   :  { %4085 = vmatpush3.bf16.msra.mxu0 %v4082_v4 }
  0x42   :  { %3805 = vmatmul.mubr.f32.vlgmr.msra.gmra.mrb[2].mxu0 %v4390_v55  ;;  %v4110_v55 = vpack.c.bf16 %v1224_v7, %v1217_v6 }
  0x43   :  { %3815 = vmatprep.mubr.f32.mxu0 %v4321_v22 }
 0x10c   :  { %v3729_v16 = vpop.f32.mrb[0].mxu0 }
 0x10d   :  { %v565_v17 = vpop.f32.mrb[1].mxu0  ;;  %v4126_v41 = vadd.f32 %v3729_v16, %v3505_v15  ;;  %v1226_v16 = vand.u32 4294901760, %v1225_v11 }
 0x10e   :  { %v4127_v18 = vadd.f32 %v3505_v15, %v565_v17  ;;  %v1219_v15 = vand.u32 4294901760, %v1218_v10  ;;  %v1233_v17 = vand.u32 4294901760, %v1232_v12 }
 0x10f   :  { %v2107_v43 = vsel %vm1653_vm2, %v4126_v41, 0 }
 0x110   :  { %v3795_v20 = vpop.f32.mrb[0].mxu1  ;;  %v1655_v21 = vsel %vm1653_vm2, %v4127_v18, 0  ;;  %v2178_v45 = vand.u32 4294901760, %v2107_v43  ;;  %v1240_v18 = vand.u32 4294901760, %v1239_v13 }
 0x111   :  { %v1726_v23 = vand.u32 4294901760, %v1655_v21  ;;  %v1104_v24 = vpop.f32.mrb[1].mxu1  ;;  %v4128_v42 = vadd.f32 %v3795_v20, %v3506_v19 }
 0x112   :  { %v4129_v26 = vadd.f32 %v3506_v19, %v1104_v24  ;;  %v2179_v47 = vsub.f32 %v2107_v43, %v2178_v45  ;;  %v4086_v19 = vpack.c.bf16 %v1226_v16, %v1219_v15  ;;  %v4090_v20 = vpack.c.bf16 %v1240_v18, %v1233_v17 }
 0x113   :  { %v1727_v27 = vsub.f32 %v1655_v21, %v1726_v23  ;;  %v2110_v44 = vsel %vm1653_vm2, %v4128_v42, 0  ;;  %v4094_v21 = vpack.c.bf16 %v1223_v2, %v1216_v1  ;;  %v4114_v24 = vpack.c.bf16 %v1238_v9, %v1231_v8 }
 0x114   :  { %v1658_v29 = vsel %vm1653_vm2, %v4129_v26, 0  ;;  %v2113_v46 = vand.u32 4294901760, %v2110_v44  ;;  %v2180_v49 = vand.u32 4294901760, %v2179_v47  ;;  %4087 = vmatprep.subr.bf16.mxu0 %v4086_v19 }
 0x115   :  { %v1728_v30 = vand.u32 4294901760, %v1727_v27  ;;  %v1661_v32 = vand.u32 4294901760, %v1658_v29  ;;  %4089 = vmatpush3.bf16.msra.mxu0 %v4086_v19 }
 0x116   :  { %v2190_v48 = vsub.f32 %v2110_v44, %v2113_v46  ;;  %v2181_v51 = vsub.f32 %v2179_v47, %v2180_v49  ;;  %4091 = vmatprep.subr.bf16.mxu0 %v4090_v20 }
 0x117   :  { %v1738_v33 = vsub.f32 %v1658_v29, %v1661_v32  ;;  %3863 = vmatpush3.xpose.msra.mxu1 %v1661_v32  ;;  %v1729_v34 = vsub.f32 %v1727_v27, %v1728_v30 }
 0x118   :  { %3867 = vmatprep.subr.mxu1 %v4239_v14  ;;  %v2191_v50 = vand.u32 4294901760, %v2190_v48  ;;  %v2182_v53 = vand.u32 4294901760, %v2181_v51 }
 0x119   :  { %v1739_v36 = vand.u32 4294901760, %v1738_v33  ;;  %v1730_v37 = vand.u32 4294901760, %v1729_v34  ;;  %4093 = vmatpush3.bf16.msra.mxu0 %v4090_v20 }
 0x11a   :  { %v2192_v52 = vsub.f32 %v2190_v48, %v2191_v50  ;;  %4095 = vmatprep.subr.bf16.mxu0 %v4094_v21 }
 0x11b   :  { %3865 = vmatmul.mubr.f32.vlgmr.msra.gmra.mrb[2].mxu1 %v1730_v37  ;;  %v1740_v38 = vsub.f32 %v1738_v33, %v1739_v36 }
 0x11c   :  { %3869 = vmatprep.mubr.msk.f32.mxu1 %vm4240_vm1, %v4239_v14  ;;  %v2193_v54 = vand.u32 4294901760, %v2192_v52  ;;  %3816 = vmatmul.mubr.f32.vlgmr.msra.gmra.mrb[2].mxu0 %v4327_v25 }
 0x11d   :  { %v1741_v40 = vand.u32 4294901760, %v1740_v38  ;;  %4097 = vmatpush3.bf16.msra.mxu0 %v4094_v21  ;;  %3826 = vmatprep.mubr.f32.mxu0 %v4336_v28  ;;  %v2558_v28 = vlaneseq }
 0x11f   :  { %3868 = vmatpush3.xpose.msra.mxu1 %v1741_v40  ;;  %v3507_v40 = vld [vmem:[%s4596_s6] ss:$0 sm:$0xff]  ;;  %s4241_s6 = smov [#allocation2]  }
 0x120   :  { %3872 = vmatprep.subr.mxu1 %v4239_v14  ;;  %s3494_s29 = sshll.u32 %s4241_s6, 4  ;;  %s3495_s29 = int_to_ptr.vmem [resolvable:$true] %s3494_s29 }
 0x121   :  { %s4215_s30 = scalar_lea.vmem %s3495_s29, 256  ;;  %p4220_p1 = scmp.lt.s32.totalorder %s3495_s29, %s3495_s29 }
 0x122   :  { %p4216_p0 = scmp.ne.s32.totalorder %s3495_s29, %s4215_s30  ;;  %p4221_p2 = scmp.lt.s32.totalorder %s4215_s30, %s4215_s30 }
 0x123   :  { %3870 = vmatmul.mubr.f32.vlgmr.msra.gmra.mrb[2].mxu1 %v1726_v23 }
 0x124   :  { %3873 = vmatpush3.xpose.msra.mxu1 %v1738_v33  ;;  %3874 = vmatprep.mubr.msk.f32.mxu1 %vm4240_vm1, %v4239_v14  ;;  %p4222_p3 = por %p4221_p2, %p4220_p1 }
 0x125   :  { %3877 = vmatprep.subr.mxu1 %v4239_v14 }
 0x126   :  { %p4223_p4 = pnand %p4222_p3, %p4216_p0 }
 0x12b   :  { %3875 = vmatmul.mubr.f32.vlgmr.msra.gmra.mrb[2].mxu1 %v1727_v27 }
 0x12c   :  { %3878 = vmatpush3.xpose.msra.mxu1 %v1661_v32  ;;  %3879 = vmatprep.mubr.msk.f32.mxu1 %vm4240_vm1, %v4239_v14 }
 0x12d   :  { %3882 = vmatprep.subr.mxu1 %v4239_v14 }
 0x133   :  { %3880 = vmatmul.mubr.f32.vlgmr.msra.gmra.mrb[2].mxu1 %v1728_v30 }
 0x134   :  { %3883 = vmatpush3.xpose.msra.mxu1 %v1739_v36  ;;  %3884 = vmatprep.mubr.msk.f32.mxu1 %vm4240_vm1, %v4239_v14 }
 0x135   :  { %3887 = vmatprep.subr.mxu1 %v4239_v14 }
 0x13b   :  { %3885 = vmatmul.mubr.f32.vlgmr.msra.gmra.mrb[2].mxu1 %v1726_v23 }
 0x13c   :  { %3888 = vmatpush3.xpose.msra.mxu1 %v1661_v32  ;;  %3889 = vmatprep.mubr.msk.f32.mxu1 %vm4240_vm1, %v4239_v14 }
 0x13d   :  { %3892 = vmatprep.subr.mxu1 %v4239_v14 }
 0x143   :  { %3890 = vmatmul.mubr.f32.vlgmr.msra.gmra.mrb[2].mxu1 %v1726_v23  ;;  %v4098_v23 = vpack.c.bf16 %v1237_v5, %v1230_v3 }
 0x144   :  { %3893 = vmatpush3.xpose.msra.mxu1 %v2113_v46  ;;  %3894 = vmatprep.mubr.msk.f32.mxu1 %vm4240_vm1, %v4239_v14 }
 0x145   :  { %3897 = vmatprep.subr.mxu1 %v4239_v14  ;;  %4099 = vmatprep.subr.bf16.mxu0 %v4098_v23 }
 0x146   :  { %4101 = vmatpush3.bf16.msra.mxu0 %v4098_v23 }
 0x147   :  { %3895 = vmatmul.mubr.f32.vlgmr.msra.gmra.mrb[4].mxu1 %v2182_v53  ;;  %4103 = vmatprep.subr.bf16.mxu0 %v4078_v0 }
 0x148   :  { %3898 = vmatpush3.xpose.msra.mxu1 %v2193_v54  ;;  %3899 = vmatprep.mubr.msk.f32.mxu1 %vm4240_vm1, %v4239_v14 }
 0x149   :  { %3902 = vmatprep.subr.mxu1 %v4239_v14  ;;  %3827 = vmatmul.mubr.f32.vlgmr.msra.gmra.mrb[2].mxu0 %v4345_v31  ;;  %v2559_v31 = vshrl.u32 %v2558_v28, 7 }
 0x14a   :  { %4105 = vmatpush3.bf16.msra.mxu0 %v4078_v0  ;;  %3837 = vmatprep.mubr.f32.mxu0 %v4353_v35  ;;  %v2561_v35 = vand.u32 127, %v2558_v28 }
 0x14b   :  { %4107 = vmatprep.subr.bf16.mxu0 %v4082_v4 }
 0x14c   :  { %vm2562_vm3 = vcmp.ge.s32.totalorder %v2559_v31, %v2561_v35 }
 0x14e   :  { %4109 = vmatpush3.bf16.msra.mxu0 %v4082_v4 }
 0x14f   :  { %3900 = vmatmul.mubr.f32.vlgmr.msra.gmra.mrb[4].mxu1 %v2178_v45  ;;  %4111 = vmatprep.subr.bf16.mxu0 %v4110_v55 }
 0x150   :  { %3903 = vmatpush3.xpose.msra.mxu1 %v2190_v48  ;;  %3904 = vmatprep.mubr.msk.f32.mxu1 %vm4240_vm1, %v4239_v14 }
 0x151   :  { %3907 = vmatprep.subr.mxu1 %v4239_v14  ;;  %3838 = vmatmul.mubr.f32.vlgmr.msra.gmra.mrb[2].mxu0 %v4360_v39 }
 0x152   :  { %4113 = vmatpush3.bf16.msra.mxu0 %v4110_v55  ;;  %3848 = vmatprep.mubr.f32.mxu0 %v4321_v22 }
 0x153   :  { %4115 = vmatprep.subr.bf16.mxu0 %v4114_v24 }
 0x156   :  { %4117 = vmatpush3.bf16.msra.mxu0 %v4114_v24 }
 0x157   :  { %3905 = vmatmul.mubr.f32.vlgmr.msra.gmra.mrb[4].mxu1 %v2179_v47  ;;  %4119 = vmatprep.subr.bf16.mxu0 %v4078_v0 }
 0x158   :  { %3908 = vmatpush3.xpose.msra.mxu1 %v2113_v46  ;;  %3909 = vmatprep.mubr.msk.f32.mxu1 %vm4240_vm1, %v4239_v14 }
 0x159   :  { %3912 = vmatprep.subr.mxu1 %v4239_v14  ;;  %3849 = vmatmul.mubr.f32.vlgmr.msra.gmra.mrb[2].mxu0 %v4327_v25 }
 0x15a   :  { %4121 = vmatpush3.bf16.msra.mxu0 %v4078_v0  ;;  %3859 = vmatprep.mubr.f32.mxu0 %v4321_v22 }
 0x15b   :  { %4123 = vmatprep.subr.bf16.mxu0 %v4082_v4 }
 0x15e   :  { %4125 = vmatpush3.bf16.msra.mxu0 %v4082_v4 }
 0x15f   :  { %3910 = vmatmul.mubr.f32.vlgmr.msra.gmra.mrb[4].mxu1 %v2180_v49  ;;  %3922 = vmatprep.subr.mxu0 %v4239_v14 }
 0x160   :  { %3913 = vmatpush3.xpose.msra.mxu1 %v2191_v50  ;;  %3914 = vmatprep.mubr.msk.f32.mxu1 %vm4240_vm1, %v4239_v14 }
 0x161   :  { %3917 = vmatprep.subr.mxu1 %v4239_v14  ;;  %3860 = vmatmul.mubr.f32.vlgmr.msra.gmra.mrb[2].mxu0 %v4327_v25 }
 0x162   :  { %3924 = vmatprep.mubr.msk.f32.mxu0 %vm4240_vm1, %v4239_v14 }
 0x167   :  { %3915 = vmatmul.mubr.f32.vlgmr.msra.gmra.mrb[4].mxu1 %v2178_v45 }
 0x168   :  { %3918 = vmatpush3.xpose.msra.mxu1 %v2113_v46  ;;  %3919 = vmatprep.mubr.msk.f32.mxu1 %vm4240_vm1, %v4239_v14 }
 0x169   :  { %3952 = vmatprep.subr.mxu1 %v4239_v14 }
 0x16f   :  { %3920 = vmatmul.mubr.f32.vlgmr.msra.gmra.mrb[4].mxu1 %v2178_v45 }
 0x170   :  { %3954 = vmatprep.mubr.msk.f32.mxu1 %vm4240_vm1, %v4239_v14 }
 0x216   :  { %v2102_v39 = vpop.f32.mrb[2].mxu1 }
 0x217   :  { %v2565_v26 = vsel %vm2562_vm3, %v2102_v39, -inf  ;;  %v3891_v27 = vpop.f32.mrb[3].mxu1 }
 0x218   :  { %v2567_v29 = vsel %vm1653_vm2, %v2565_v26, -inf }
 0x219   :  { %2568 = vmax.xlane.f32.xlu0 %v2567_v29 }
 0x234   :  { %v3861_v41 = vpop.f32.mrb[2].mxu0 }
 0x235   :  { %v4130_v42 = vadd.f32 %v3861_v41, %v3507_v40  ;;  %v1643_v43 = vpop.f32.mrb[3].mxu0 }
 0x236   :  { %v4131_v45 = vadd.f32 %v3507_v40, %v1643_v43 }
 0x237   :  { %v4537_v47 = vand.u32 4294901760, %v4130_v42 }
 0x238   :  { %v2593_v48 = vand.u32 4294901760, %v4131_v45 }
 0x239   :  { %3953 = vmatpush3.msra.mxu1 %v4537_v47  ;;  %v3119_v4 = vsub.f32 %v4130_v42, %v4537_v47 }
 0x23a   :  { %3923 = vmatpush3.msra.mxu0 %v2593_v48  ;;  %3957 = vmatprep.subr.mxu1 %v4239_v14  ;;  %v2670_v53 = vsub.f32 %v4131_v45, %v2593_v48 }
 0x23b   :  { %3927 = vmatprep.subr.mxu0 %v4239_v14  ;;  %v3120_v8 = vand.u32 4294901760, %v3119_v4 }
 0x23c   :  { %v2671_v57 = vand.u32 4294901760, %v2670_v53 }
 0x23d   :  { %v3121_v11 = vsub.f32 %v3119_v4, %v3120_v8 }
 0x23e   :  { %v2672_v61 = vsub.f32 %v2670_v53, %v2671_v57 }
 0x23f   :  { %v3122_v15 = vand.u32 4294901760, %v3121_v11 }
 0x240   :  { %v2673_v0 = vand.u32 4294901760, %v2672_v61 }
 0x242   :  { %v2554_v22 = vpop.f32.mrb[4].mxu1 }
 0x243   :  { %v2566_v30 = vsel %vm2562_vm3, %v2554_v22, -inf  ;;  %v3921_v32 = vpop.f32.mrb[5].mxu1 }
 0x244   :  { %v2570_v33 = vsel %vm1653_vm2, %v2566_v30, -inf }
 0x245   :  { %2571 = vmax.xlane.f32.xlu0 %v2570_v33 }
 0x2a6   :  { %v2569_v25 = vpop.xlane.xlu0 %2568 }
 0x2a7   :  { %v2573_v34 = vsub.f32 %v2565_v26, %v2569_v25 }
 0x2a9   :  { %v2575_v36 = vmul.f32 1.442695, %v2573_v34 }
 0x2ab   :  { %4207 = vpow2.f32 %v2575_v36 }
 0x2b5   :  { %v4208_v37 = vpop.eup %4207 }
 0x2b6   :  { %v2579_v38 = vsel %vm1653_vm2, %v4208_v37, 0.0 }
 0x2b7   :  { %2580 = vadd.xlane.f32.xlu1 %v2579_v38 }
 0x2d2   :  { %v2572_v44 = vpop.xlane.xlu0 %2571 }
 0x2d3   :  { %v2574_v46 = vsub.f32 %v2566_v30, %v2572_v44 }
 0x2d5   :  { %v2577_v49 = vmul.f32 1.442695, %v2574_v46 }
 0x2d7   :  { %4209 = vpow2.f32 %v2577_v49 }
 0x2e1   :  { %v4210_v50 = vpop.eup %4209 }
 0x2e2   :  { %v2582_v51 = vsel %vm1653_vm2, %v4210_v50, 0.0 }
 0x2e3   :  { %2583 = vadd.xlane.f32.xlu1 %v2582_v51 }
 0x344   :  { %v2581_v52 = vpop.xlane.xlu1 %2580 }
 0x345   :  { %4211 = vrcp.f32 %v2581_v52 }
 0x34f   :  { %v4212_v54 = vpop.eup %4211 }
 0x350   :  { %v2586_v56 = vmul.f32 %v4212_v54, %v4208_v37 }
 0x352   :  { %v2590_v58 = vsel %vm1653_vm2, %v2586_v56, 0 }
 0x353   :  { %v2658_v59 = vand.u32 4294901760, %v2590_v58 }
 0x355   :  { %v2659_v60 = vsub.f32 %v2590_v58, %v2658_v59 }
 0x357   :  { %v2660_v62 = vand.u32 4294901760, %v2659_v60 }
 0x359   :  { %v2661_v63 = vsub.f32 %v2659_v60, %v2660_v62 }
 0x35b   :  { %v2662_v1 = vand.u32 4294901760, %v2661_v63 }
 0x35d   :  { %3925 = vmatmul.mubr.f32.vlgmr.msra.gmra.mrb[4].mxu0 %v2662_v1 }
 0x35e   :  { %3928 = vmatpush3.msra.mxu0 %v2673_v0  ;;  %3929 = vmatprep.mubr.msk.f32.mxu0 %vm4240_vm1, %v4239_v14 }
 0x35f   :  { %3932 = vmatprep.subr.mxu0 %v4239_v14 }
 0x365   :  { %3930 = vmatmul.mubr.f32.vlgmr.msra.gmra.mrb[4].mxu0 %v2658_v59 }
 0x366   :  { %3933 = vmatpush3.msra.mxu0 %v2670_v53  ;;  %3934 = vmatprep.mubr.msk.f32.mxu0 %vm4240_vm1, %v4239_v14 }
 0x367   :  { %3937 = vmatprep.subr.mxu0 %v4239_v14 }
 0x36d   :  { %3935 = vmatmul.mubr.f32.vlgmr.msra.gmra.mrb[4].mxu0 %v2659_v60 }
 0x36e   :  { %3938 = vmatpush3.msra.mxu0 %v2593_v48  ;;  %3939 = vmatprep.mubr.msk.f32.mxu0 %vm4240_vm1, %v4239_v14 }
 0x36f   :  { %3942 = vmatprep.subr.mxu0 %v4239_v14 }
 0x370   :  { %v2584_v2 = vpop.xlane.xlu1 %2583 }
 0x371   :  { %4213 = vrcp.f32 %v2584_v2 }
 0x375   :  { %3940 = vmatmul.mubr.f32.vlgmr.msra.gmra.mrb[4].mxu0 %v2660_v62 }
 0x376   :  { %3943 = vmatpush3.msra.mxu0 %v2671_v57  ;;  %3944 = vmatprep.mubr.msk.f32.mxu0 %vm4240_vm1, %v4239_v14 }
 0x377   :  { %3947 = vmatprep.subr.mxu0 %v4239_v14 }
 0x37b   :  { %v4214_v3 = vpop.eup %4213 }
 0x37c   :  { %v2588_v5 = vmul.f32 %v4214_v3, %v4210_v50 }
 0x37d   :  { %3945 = vmatmul.mubr.f32.vlgmr.msra.gmra.mrb[4].mxu0 %v2658_v59 }
 0x37e   :  { %v3039_v6 = vsel %vm1653_vm2, %v2588_v5, 0  ;;  %3948 = vmatpush3.msra.mxu0 %v2593_v48  ;;  %3949 = vmatprep.mubr.msk.f32.mxu0 %vm4240_vm1, %v4239_v14 }
 0x37f   :  { %v3107_v7 = vand.u32 4294901760, %v3039_v6 }
 0x381   :  { %v3108_v9 = vsub.f32 %v3039_v6, %v3107_v7 }
 0x383   :  { %v3109_v10 = vand.u32 4294901760, %v3108_v9 }
 0x385   :  { %3950 = vmatmul.mubr.f32.vlgmr.msra.gmra.mrb[4].mxu0 %v2658_v59  ;;  %v3110_v12 = vsub.f32 %v3108_v9, %v3109_v10 }
 0x387   :  { %v3111_v13 = vand.u32 4294901760, %v3110_v12 }
 0x389   :  { %3955 = vmatmul.mubr.f32.vlgmr.msra.gmra.mrb[6].mxu1 %v3111_v13 }
 0x38a   :  { %3958 = vmatpush3.msra.mxu1 %v3122_v15  ;;  %3959 = vmatprep.mubr.msk.f32.mxu1 %vm4240_vm1, %v4239_v14 }
 0x38b   :  { %3962 = vmatprep.subr.mxu1 %v4239_v14 }
 0x391   :  { %3960 = vmatmul.mubr.f32.vlgmr.msra.gmra.mrb[6].mxu1 %v3107_v7 }
 0x392   :  { %3963 = vmatpush3.msra.mxu1 %v3119_v4  ;;  %3964 = vmatprep.mubr.msk.f32.mxu1 %vm4240_vm1, %v4239_v14 }
 0x393   :  { %3967 = vmatprep.subr.mxu1 %v4239_v14 }
 0x399   :  { %3965 = vmatmul.mubr.f32.vlgmr.msra.gmra.mrb[6].mxu1 %v3108_v9 }
 0x39a   :  { %3968 = vmatpush3.msra.mxu1 %v4537_v47  ;;  %3969 = vmatprep.mubr.msk.f32.mxu1 %vm4240_vm1, %v4239_v14 }
 0x39b   :  { %3972 = vmatprep.subr.mxu1 %v4239_v14 }
 0x3a1   :  { %3970 = vmatmul.mubr.f32.vlgmr.msra.gmra.mrb[6].mxu1 %v3109_v10 }
 0x3a2   :  { %3973 = vmatpush3.msra.mxu1 %v3120_v8  ;;  %3974 = vmatprep.mubr.msk.f32.mxu1 %vm4240_vm1, %v4239_v14 }
 0x3a3   :  { %3977 = vmatprep.subr.mxu1 %v4239_v14 }
 0x3a9   :  { %3975 = vmatmul.mubr.f32.vlgmr.msra.gmra.mrb[6].mxu1 %v3107_v7 }
 0x3aa   :  { %3978 = vmatpush3.msra.mxu1 %v4537_v47  ;;  %3979 = vmatprep.mubr.msk.f32.mxu1 %vm4240_vm1, %v4239_v14 }
 0x3b1   :  { %3980 = vmatmul.mubr.f32.vlgmr.msra.gmra.mrb[6].mxu1 %v3107_v7 }
 0x458   :  { %v3034_v16 = vpop.f32.mrb[4].mxu0 }
 0x459   :  { %3487 = vst.msk [vmem:[#allocation2] sm:$0xff] %vm1653_vm2, %v3034_v16  ;;  %v3951_v17 = vpop.f32.mrb[5].mxu0 }
 0x484   :  { %v3483_v18 = vpop.f32.mrb[6].mxu1 }
 0x485   :  { %3488 = vst.msk [vmem:[#allocation2 + $0x8] sm:$0xff] %vm1653_vm2, %v3483_v18  ;;  %v3981_v19 = vpop.f32.mrb[7].mxu1 }
 0x486   :  { %4226 = shalt.err (!%p4223_p4)
}
 0x487   :  { %s4227_s10 = scalar_lea.hbm %s4597_s7, 256 }
 0x488   :  { %p4228_p5 = scmp.ne.s32.totalorder %s4597_s7, %s4227_s10  ;;  %p4231_p6 = scmp.lt.u32.totalorder %s4227_s10, %s4597_s7 }
 0x48a   :  { %p4233_p7 = pnand %p4231_p6, %p4228_p5 }
 0x48c   :  { %4236 = shalt.err (!%p4233_p7)
}
 0x48d   :  { %s4242_s15 = smov 128   ;;  %s4243_s16 = smov 8  }
 0x48e   :  { %3500 = dma.vmem_to_hbm [thread:$0]  %s3495_s29, 256, %s4597_s7, [#allocation3], %s4242_s15, %s4242_s15, %s4243_s16  }
 0x48f   :  { %4237 = dma.done.wait [#allocation3], 256  }
 0x490   :  { %4238 = vsyncadd [#allocation3], 4294967040 }
 0x491   :  { %3504 = vsyncpa [#allocation3], 1 }

</bundles_post_ra>
